<compile_context>
chip_gen: v7x
topology: tpu7x:2x2x1
jax: 0.10.0
libtpu: 0.0.40
codegen_flags: <defaults>
</compile_context>

<pallas_src>
import jax
import jax.numpy as jnp
from jax.experimental import pallas as pl
from jax.experimental.pallas import tpu as pltpu


def _round_up(x: int, m: int) -> int:
    return ((x + m - 1) // m) * m


def _cdiv(a: int, b: int) -> int:
    return -(-a // b)


def _make_sample_kernel(start: int, end: int, tv: int, k0: int, n_chunks: int):
    """Greedy argmax + log-softmax prob over [start, end), vocab-chunked."""

    mask_first = (start % tv) != 0
    mask_last = (end % tv) != 0
    n_edge = int(mask_first) + int(mask_last)
    if not (mask_first or mask_last):
        mode = "plain"            # every chunk fully inside the codebook
    elif n_chunks <= n_edge:
        mode = "masked"           # every chunk is an edge chunk
    else:
        mode = "dual"             # interior chunks skip the mask entirely

    def chunk_stats(x, lane, lo=None, hi=None, masked=False):
        # Chunk-local (max, first-argmax lane, sum exp(x - max)).
        if masked:
            neg = jnp.array(-jnp.inf, dtype=x.dtype)
            x = jnp.where((lane >= lo) & (lane < hi), x, neg)
        mc_n = jnp.max(x, axis=-1, keepdims=True)          # native dtype (bf16 ok)
        xf = x.astype(jnp.float32)
        mc = mc_n.astype(jnp.float32)
        big = jnp.int32(2 ** 30)
        idxc = jnp.min(jnp.where(xf == mc, lane, big), axis=-1, keepdims=True)
        m_safe = jnp.where(mc == -jnp.inf, 0.0, mc)        # all--inf chunk guard
        sc = jnp.sum(jnp.exp(xf - m_safe), axis=-1, keepdims=True)
        return mc, idxc, sc

    def kernel(logits_ref, tok_ref, logp_ref,
               m_sc, best_sc, sum_sc, cm_sc, ci_sc, cs_sc):
        k = pl.program_id(1)                     # vocab-chunk index (innermost)
        nk = pl.num_programs(1)

        @pl.when(k == 0)
        def _():
            m_sc[...] = jnp.full_like(m_sc, -jnp.inf)
            best_sc[...] = jnp.full_like(best_sc, start)
            sum_sc[...] = jnp.zeros_like(sum_sc)

        x = logits_ref[...]                      # (tm, tv), native dtype
        tm_, tv_ = x.shape
        lane = jax.lax.broadcasted_iota(jnp.int32, (tm_, tv_), 1)
        base = (k0 + k) * tv                     # absolute column of lane 0
        lo = start - base                        # chunk-local valid bounds
        hi = end - base

        if mode == "plain":
            mc, idxc, sc = chunk_stats(x, lane)
        elif mode == "masked":
            mc, idxc, sc = chunk_stats(x, lane, lo, hi, masked=True)
        else:  # dual: unmasked fast path, edge chunks recompute under pl.when
            mc0, idx0, sc0 = chunk_stats(x, lane)
            cm_sc[...] = mc0
            ci_sc[...] = idx0
            cs_sc[...] = sc0
            if mask_first and mask_last:
                is_edge = (k == 0) | (k == nk - 1)
            elif mask_first:
                is_edge = k == 0
            else:
                is_edge = k == nk - 1

            @pl.when(is_edge)
            def _():
                mc1, idx1, sc1 = chunk_stats(x, lane, lo, hi, masked=True)
                cm_sc[...] = mc1
                ci_sc[...] = idx1
                cs_sc[...] = sc1

            mc = cm_sc[...]
            idxc = ci_sc[...]
            sc = cs_sc[...]

        # Two-level online-softmax merge of the chunk stats into the carry.
        # Chunks arrive in increasing column order and `mc > m_old` is strict,
        # so ties keep the first (smallest-index) maximum.
        m_old = m_sc[...]
        m_new = jnp.maximum(m_old, mc)
        m_safe = jnp.where(m_new == -jnp.inf, 0.0, m_new)     # NaN guards
        alpha = jnp.where(m_old == -jnp.inf, 0.0, jnp.exp(m_old - m_safe))
        beta = jnp.where(mc == -jnp.inf, 0.0, jnp.exp(mc - m_safe))
        best_sc[...] = jnp.where(mc > m_old, idxc + base, best_sc[...])
        sum_sc[...] = alpha * sum_sc[...] + beta * sc
        m_sc[...] = m_new

        @pl.when(k == nk - 1)
        def _():
            tok_ref[...] = best_sc[...]
            # log p(argmax) = m - logsumexp = -log(sum exp(x - m))
            logp_ref[...] = -jnp.log(sum_sc[...])

    return kernel


def transformer_sample(logits, codebook_start: int, codebook_end: int,
                       *, tm: int = 512, tv: int | None = None):
    """Pallas wrapper for BaseTransformer.sample with a greedy sampler.

    logits: (B, S, V) float array (f32 or bf16)
    returns: tokens (B, S) int32 in [codebook_start, codebook_end),
             sampler memo log-probs (B, S) float32
    """
    B, S, V = logits.shape
    start, end = int(codebook_start), int(codebook_end)
    assert 0 <= start < end <= V, "empty/invalid codebook slice"
    N = B * S

    itemsize = jnp.dtype(logits.dtype).itemsize
    sub = max(8, 32 // itemsize)          # sublane packing (8 f32, 16 bf16)

    # ---- row tile ------------------------------------------------------
    if N <= sub:
        tm = N                             # full-dim block (no padding needed)
    else:
        tm = max(sub, (min(tm, N) // sub) * sub)
        if _cdiv(N, tm) == 1 and N >= 2 * sub:
            # Ensure >=2 row tiles so both v7x TensorCores get work.
            tm = _round_up(_cdiv(N, 2), sub)
    n_row_tiles = _cdiv(N, tm)

    # ---- vocab chunk (multiple of 128; need NOT divide V) ---------------
    if V <= 128:
        tv = V
    elif tv is not None:
        tv = max(128, (min(tv, V) // 128) * 128)
    else:
        budget = 16 * 1024 * 1024          # double-buffered input byte budget
        cap = (budget // (2 * tm * itemsize)) // 128 * 128
        cap = max(128, min(cap, (V // 128) * 128, _round_up(end, 128)))
        # per-chunk fixed cost (~0.35us) expressed in streamed columns
        pen = max(128, 280_000 // (tm * itemsize))
        best_tv, best_cost = 128, None
        for cand in range(128, cap + 1, 128):
            nck = _cdiv(end, cand) - start // cand
            cost = nck * cand + pen * nck
            if best_cost is None or cost <= best_cost:
                best_tv, best_cost = cand, cost
        tv = best_tv

    k0 = start // tv
    k_hi = (end - 1) // tv
    n_chunks = k_hi - k0 + 1               # only chunks touching the codebook

    flat = logits.reshape(N, V)            # free reshape, no HBM copy
    kernel = _make_sample_kernel(start, end, tv, k0, n_chunks)

    grid_spec = pltpu.PrefetchScalarGridSpec(
        num_scalar_prefetch=0,
        grid=(n_row_tiles, n_chunks),
        in_specs=[pl.BlockSpec((tm, tv), lambda i, k: (i, k0 + k))],
        out_specs=[
            pl.BlockSpec((tm, 1), lambda i, k: (i, 0)),
            pl.BlockSpec((tm, 1), lambda i, k: (i, 0)),
        ],
        scratch_shapes=[
            pltpu.VMEM((tm, 1), jnp.float32),   # running max
            pltpu.VMEM((tm, 1), jnp.int32),     # running argmax (abs token id)
            pltpu.VMEM((tm, 1), jnp.float32),   # running sum exp(x - max)
            pltpu.VMEM((tm, 1), jnp.float32),   # chunk max      (dual mode)
            pltpu.VMEM((tm, 1), jnp.int32),     # chunk argmax   (dual mode)
            pltpu.VMEM((tm, 1), jnp.float32),   # chunk sum-exp  (dual mode)
        ],
    )

    vmem_limit = int(max(32 * 1024 * 1024, 2 * tm * tv * itemsize + (8 << 20)))
    tokens, logp = pl.pallas_call(
        kernel,
        out_shape=(
            jax.ShapeDtypeStruct((N, 1), jnp.int32),
            jax.ShapeDtypeStruct((N, 1), jnp.float32),
        ),
        grid_spec=grid_spec,
        compiler_params=pltpu.CompilerParams(
            dimension_semantics=("parallel", "arbitrary"),
            vmem_limit_bytes=vmem_limit,
        ),
    )(flat)

    return tokens[:, 0].reshape(B, S), logp[:, 0].reshape(B, S)


def _check(logits, start, end, tokens, logp, tol=1e-3):
    sliced = logits[..., start:end].astype(jnp.float32)
    ref_tok = jnp.argmax(sliced, axis=-1).astype(jnp.int32) + start
    ref_logp = jnp.max(sliced, axis=-1) - jax.scipy.special.logsumexp(sliced, axis=-1)
    assert tokens.shape == ref_tok.shape and tokens.dtype == jnp.int32
    assert bool(jnp.all(tokens == ref_tok)), "token mismatch"
    assert bool(jnp.all(jnp.abs(logp - ref_logp) < tol)), "logp mismatch"
    assert bool(jnp.all((tokens >= start) & (tokens < end)))


if __name__ == "__main__":
    key = jax.random.PRNGKey(0)
    k1, k2, k3, k4 = jax.random.split(key, 4)

    # Test 1: module-consistent small shapes; narrow codebook -> "masked" mode,
    # single vocab chunk, row axis split into two tiles.
    B, S, VOCAB = 2, 8, 512
    CB_START, CB_END = 64, 448
    logits = jax.random.normal(k1, (B, S, VOCAB), dtype=jnp.float32)
    tok, lp = transformer_sample(logits, CB_START, CB_END)
    jax.block_until_ready((tok, lp))
    _check(logits, CB_START, CB_END, tok, lp)

    # Test 2: many vocab chunks with unaligned codebook edges -> "dual" mode
    # (interior chunks unmasked, edge chunks re-stat under pl.when).
    B2, S2, V2 = 2, 64, 1024
    logits2 = jax.random.normal(k2, (B2, S2, V2), dtype=jnp.float32)
    tok2, lp2 = transformer_sample(logits2, 100, 900, tv=128)
    jax.block_until_ready((tok2, lp2))
    _check(logits2, 100, 900, tok2, lp2)

    # Test 3: V not a multiple of 128, full-vocab codebook -> ragged last vocab
    # chunk reads past V and is masked; ragged last row tile; "dual" mode.
    B3, S3, V3 = 2, 5, 960
    logits3 = jax.random.normal(k3, (B3, S3, V3), dtype=jnp.float32)
    tok3, lp3 = transformer_sample(logits3, 0, V3)
    jax.block_until_ready((tok3, lp3))
    _check(logits3, 0, V3, tok3, lp3)

    # Test 4: bf16 logits, aligned full-range codebook -> "plain" (mask-free)
    # mode with a full-dim (small-N) row block.
    B4, S4, V4 = 1, 9, 512
    logits4 = jax.random.normal(k4, (B4, S4, V4), dtype=jnp.bfloat16)
    tok4, lp4 = transformer_sample(logits4, 0, V4)
    jax.block_until_ready((tok4, lp4))
    _check(logits4, 0, V4, tok4, lp4)

    print("KERNEL_OK")
</pallas_src>

<mosaic_0001>
module attributes {stable_mosaic.version = 11 : i64} {
  func.func @kernel(%arg0: i32, %arg1: i32, %arg2: memref<8x512xf32, #tpu.memory_space<vmem>>, %arg3: memref<8x1xi32, #tpu.memory_space<vmem>>, %arg4: memref<8x1xf32, #tpu.memory_space<vmem>>, %arg5: memref<8x1xf32, #tpu.memory_space<vmem>>, %arg6: memref<8x1xi32, #tpu.memory_space<vmem>>, %arg7: memref<8x1xf32, #tpu.memory_space<vmem>>, %arg8: memref<8x1xf32, #tpu.memory_space<vmem>>, %arg9: memref<8x1xi32, #tpu.memory_space<vmem>>, %arg10: memref<8x1xf32, #tpu.memory_space<vmem>>) attributes {dimension_semantics = [#tpu.dimension_semantics<parallel>, #tpu.dimension_semantics<arbitrary>], iteration_bounds = array<i64: 2, 1>, scalar_prefetch = 0 : i64, scratch_operands = 6 : i64, tpu.core_type = #tpu.core_type<tc>, window_params = [{transform_indices = @transform_0, window_bounds = array<i64: 8, 512>}, {transform_indices = @transform_1, window_bounds = array<i64: 8, 1>}, {transform_indices = @transform_2, window_bounds = array<i64: 8, 1>}]} {
    %c0_i32 = arith.constant 0 : i32
    %0 = arith.cmpi eq, %arg1, %c0_i32 : i32
    %1 = arith.extui %0 : i1 to i32
    %c0_i32_0 = arith.constant 0 : i32
    %2 = arith.cmpi ne, %1, %c0_i32_0 : i32
    scf.if %2 {
      %cst_28 = arith.constant 0xFF800000 : f32
      %66 = vector.broadcast %cst_28 : f32 to vector<8x1xf32>
      %c0_29 = arith.constant 0 : index
      %c0_30 = arith.constant 0 : index
      %67 = vector.load %arg5[%c0_29, %c0_30] : memref<8x1xf32, #tpu.memory_space<vmem>>, vector<8x1xf32>
      tpu.vector_store %arg5[%c0_29, %c0_30], %66 {strides = array<i32>} : memref<8x1xf32, #tpu.memory_space<vmem>>, vector<8x1xf32>,
      %c64_i32_31 = arith.constant 64 : i32
      %68 = vector.broadcast %c64_i32_31 : i32 to vector<8x1xi32>
      %c0_32 = arith.constant 0 : index
      %c0_33 = arith.constant 0 : index
      %69 = vector.load %arg6[%c0_32, %c0_33] : memref<8x1xi32, #tpu.memory_space<vmem>>, vector<8x1xi32>
      tpu.vector_store %arg6[%c0_32, %c0_33], %68 {strides = array<i32>} : memref<8x1xi32, #tpu.memory_space<vmem>>, vector<8x1xi32>,
      %cst_34 = arith.constant 0.000000e+00 : f32
      %70 = vector.broadcast %cst_34 : f32 to vector<8x1xf32>
      %c0_35 = arith.constant 0 : index
      %c0_36 = arith.constant 0 : index
      %71 = vector.load %arg7[%c0_35, %c0_36] : memref<8x1xf32, #tpu.memory_space<vmem>>, vector<8x1xf32>
      tpu.vector_store %arg7[%c0_35, %c0_36], %70 {strides = array<i32>} : memref<8x1xf32, #tpu.memory_space<vmem>>, vector<8x1xf32>,
    } else {
    }
    %c0 = arith.constant 0 : index
    %c0_1 = arith.constant 0 : index
    %3 = vector.load %arg2[%c0, %c0_1] : memref<8x512xf32, #tpu.memory_space<vmem>>, vector<8x512xf32>
    %4 = tpu.iota {dimensions = array<i32: 1>} : vector<8x512xi32>
    %c0_i32_2 = arith.constant 0 : i32
    %5 = arith.addi %c0_i32_2, %arg1 : i32
    %c512_i32 = arith.constant 512 : i32
    %6 = arith.muli %5, %c512_i32 : i32
    %c64_i32 = arith.constant 64 : i32
    %7 = arith.subi %c64_i32, %6 : i32
    %c448_i32 = arith.constant 448 : i32
    %8 = arith.subi %c448_i32, %6 : i32
    %9 = vector.broadcast %7 : i32 to vector<8x512xi32>
    %10 = arith.cmpi sge, %4, %9 : vector<8x512xi32>
    %11 = vector.broadcast %8 : i32 to vector<8x512xi32>
    %12 = arith.cmpi slt, %4, %11 : vector<8x512xi32>
    %13 = arith.andi %10, %12 : vector<8x512xi1>
    %cst = arith.constant 0xFF800000 : f32
    %14 = vector.broadcast %cst : f32 to vector<8x512xf32>
    %15 = arith.select %13, %3, %14 : vector<8x512xi1>, vector<8x512xf32>
    %cst_3 = arith.constant dense<0xFF800000> : vector<8xf32>
    %16 = vector.multi_reduction <maximumf>, %15, %cst_3 [1] : vector<8x512xf32> to vector<8xf32>
    %17 = vector.shape_cast %16 : vector<8xf32> to vector<8x1xf32>
    %18 = vector.broadcast %17 : vector<8x1xf32> to vector<8x512xf32>
    %19 = arith.cmpf oeq, %15, %18 : vector<8x512xf32>
    %c1073741824_i32 = arith.constant 1073741824 : i32
    %20 = vector.broadcast %c1073741824_i32 : i32 to vector<8x512xi32>
    %21 = arith.select %19, %4, %20 : vector<8x512xi1>, vector<8x512xi32>
    %cst_4 = arith.constant dense<2147483647> : vector<8xi32>
    %22 = vector.multi_reduction <minsi>, %21, %cst_4 [1] : vector<8x512xi32> to vector<8xi32>
    %23 = vector.shape_cast %22 : vector<8xi32> to vector<8x1xi32>
    %cst_5 = arith.constant 0xFF800000 : f32
    %24 = vector.broadcast %cst_5 : f32 to vector<8x1xf32>
    %25 = arith.cmpf oeq, %17, %24 : vector<8x1xf32>
    %cst_6 = arith.constant 0.000000e+00 : f32
    %26 = vector.broadcast %cst_6 : f32 to vector<8x1xf32>
    %27 = arith.select %25, %26, %17 : vector<8x1xi1>, vector<8x1xf32>
    %28 = vector.broadcast %27 : vector<8x1xf32> to vector<8x512xf32>
    %29 = arith.subf %15, %28 : vector<8x512xf32>
    %30 = math.exp %29 : vector<8x512xf32>
    %cst_7 = arith.constant dense<0.000000e+00> : vector<8xf32>
    %31 = vector.multi_reduction <add>, %30, %cst_7 [1] : vector<8x512xf32> to vector<8xf32>
    %32 = vector.shape_cast %31 : vector<8xf32> to vector<8x1xf32>
    %c0_8 = arith.constant 0 : index
    %c0_9 = arith.constant 0 : index
    %33 = vector.load %arg5[%c0_8, %c0_9] : memref<8x1xf32, #tpu.memory_space<vmem>>, vector<8x1xf32>
    %34 = arith.maximumf %33, %17 : vector<8x1xf32>
    %cst_10 = arith.constant 0xFF800000 : f32
    %35 = vector.broadcast %cst_10 : f32 to vector<8x1xf32>
    %36 = arith.cmpf oeq, %34, %35 : vector<8x1xf32>
    %cst_11 = arith.constant 0.000000e+00 : f32
    %37 = vector.broadcast %cst_11 : f32 to vector<8x1xf32>
    %38 = arith.select %36, %37, %34 : vector<8x1xi1>, vector<8x1xf32>
    %cst_12 = arith.constant 0xFF800000 : f32
    %39 = vector.broadcast %cst_12 : f32 to vector<8x1xf32>
    %40 = arith.cmpf oeq, %33, %39 : vector<8x1xf32>
    %41 = arith.subf %33, %38 : vector<8x1xf32>
    %42 = math.exp %41 : vector<8x1xf32>
    %cst_13 = arith.constant 0.000000e+00 : f32
    %43 = vector.broadcast %cst_13 : f32 to vector<8x1xf32>
    %44 = arith.select %40, %43, %42 : vector<8x1xi1>, vector<8x1xf32>
    %cst_14 = arith.constant 0xFF800000 : f32
    %45 = vector.broadcast %cst_14 : f32 to vector<8x1xf32>
    %46 = arith.cmpf oeq, %17, %45 : vector<8x1xf32>
    %47 = arith.subf %17, %38 : vector<8x1xf32>
    %48 = math.exp %47 : vector<8x1xf32>
    %cst_15 = arith.constant 0.000000e+00 : f32
    %49 = vector.broadcast %cst_15 : f32 to vector<8x1xf32>
    %50 = arith.select %46, %49, %48 : vector<8x1xi1>, vector<8x1xf32>
    %51 = arith.cmpf ogt, %17, %33 : vector<8x1xf32>
    %52 = vector.broadcast %6 : i32 to vector<8x1xi32>
    %53 = arith.addi %23, %52 : vector<8x1xi32>
    %c0_16 = arith.constant 0 : index
    %c0_17 = arith.constant 0 : index
    %54 = vector.load %arg6[%c0_16, %c0_17] : memref<8x1xi32, #tpu.memory_space<vmem>>, vector<8x1xi32>
    %55 = arith.select %51, %53, %54 : vector<8x1xi1>, vector<8x1xi32>
    %c0_18 = arith.constant 0 : index
    %c0_19 = arith.constant 0 : index
    %56 = vector.load %arg6[%c0_18, %c0_19] : memref<8x1xi32, #tpu.memory_space<vmem>>, vector<8x1xi32>
    tpu.vector_store %arg6[%c0_18, %c0_19], %55 {strides = array<i32>} : memref<8x1xi32, #tpu.memory_space<vmem>>, vector<8x1xi32>,
    %c0_20 = arith.constant 0 : index
    %c0_21 = arith.constant 0 : index
    %57 = vector.load %arg7[%c0_20, %c0_21] : memref<8x1xf32, #tpu.memory_space<vmem>>, vector<8x1xf32>
    %58 = arith.mulf %44, %57 : vector<8x1xf32>
    %59 = arith.mulf %50, %32 : vector<8x1xf32>
    %60 = arith.addf %58, %59 : vector<8x1xf32>
    %c0_22 = arith.constant 0 : index
    %c0_23 = arith.constant 0 : index
    %61 = vector.load %arg7[%c0_22, %c0_23] : memref<8x1xf32, #tpu.memory_space<vmem>>, vector<8x1xf32>
    tpu.vector_store %arg7[%c0_22, %c0_23], %60 {strides = array<i32>} : memref<8x1xf32, #tpu.memory_space<vmem>>, vector<8x1xf32>,
    %c0_24 = arith.constant 0 : index
    %c0_25 = arith.constant 0 : index
    %62 = vector.load %arg5[%c0_24, %c0_25] : memref<8x1xf32, #tpu.memory_space<vmem>>, vector<8x1xf32>
    tpu.vector_store %arg5[%c0_24, %c0_25], %34 {strides = array<i32>} : memref<8x1xf32, #tpu.memory_space<vmem>>, vector<8x1xf32>,
    %c0_i32_26 = arith.constant 0 : i32
    %63 = arith.cmpi eq, %arg1, %c0_i32_26 : i32
    %64 = arith.extui %63 : i1 to i32
    %c0_i32_27 = arith.constant 0 : i32
    %65 = arith.cmpi ne, %64, %c0_i32_27 : i32
    scf.if %65 {
      %c0_28 = arith.constant 0 : index
      %c0_29 = arith.constant 0 : index
      %66 = vector.load %arg6[%c0_28, %c0_29] : memref<8x1xi32, #tpu.memory_space<vmem>>, vector<8x1xi32>
      %c0_30 = arith.constant 0 : index
      %c0_31 = arith.constant 0 : index
      %67 = vector.load %arg3[%c0_30, %c0_31] : memref<8x1xi32, #tpu.memory_space<vmem>>, vector<8x1xi32>
      tpu.vector_store %arg3[%c0_30, %c0_31], %66 {strides = array<i32>} : memref<8x1xi32, #tpu.memory_space<vmem>>, vector<8x1xi32>,
      %c0_32 = arith.constant 0 : index
      %c0_33 = arith.constant 0 : index
      %68 = vector.load %arg7[%c0_32, %c0_33] : memref<8x1xf32, #tpu.memory_space<vmem>>, vector<8x1xf32>
      %69 = math.log %68 : vector<8x1xf32>
      %cst_34 = arith.constant 0.000000e+00 : f32
      %70 = vector.broadcast %cst_34 : f32 to vector<8x1xf32>
      %71 = arith.subf %70, %69 : vector<8x1xf32>
      %c0_35 = arith.constant 0 : index
      %c0_36 = arith.constant 0 : index
      %72 = vector.load %arg4[%c0_35, %c0_36] : memref<8x1xf32, #tpu.memory_space<vmem>>, vector<8x1xf32>
      tpu.vector_store %arg4[%c0_35, %c0_36], %71 {strides = array<i32>} : memref<8x1xf32, #tpu.memory_space<vmem>>, vector<8x1xf32>,
    } else {
    }
    return
  }
  func.func @transform_0(%arg0: i32, %arg1: i32) -> (i32, i32) {
    %c0_i32 = arith.constant 0 : i32
    %0 = arith.addi %c0_i32, %arg1 : i32
    %c0_i32_0 = arith.constant 0 : i32
    return %arg0, %0 : i32, i32
  }
  func.func @transform_1(%arg0: i32, %arg1: i32) -> (i32, i32) {
    %c0_i32 = arith.constant 0 : i32
    %c0_i32_0 = arith.constant 0 : i32
    return %arg0, %c0_i32 : i32, i32
  }
  func.func @transform_2(%arg0: i32, %arg1: i32) -> (i32, i32) {
    %c0_i32 = arith.constant 0 : i32
    %c0_i32_0 = arith.constant 0 : i32
    return %arg0, %c0_i32 : i32, i32
  }
}

</mosaic_0001>

<bundles_post_ra>
// kernel: tpu_custom_call.1
= control target key start
LH: loop header
LB: loop body
LE: loop exit
PB: predicated region body
PF: predicated region fallthrough
CT: control target
= control target key end

     0   :  { %8 = vsyncpa [#allocation9], 0  ;;  %s765_s0 = inlined_call_operand.hbm [shape: f32[16,512], index: 0, kind: input, shape index: {}]   ;;  %s766_s1 = inlined_call_operand.vmem [shape: s32[16,1], index: 1, kind: output, shape index: {0}]   ;;  %s767_s2 = inlined_call_operand.vmem [shape: f32[16,1], index: 2, kind: output, shape index: {1}]  }
   0x1   :  { %10 = vsyncpa [#allocation9 + $0x1], 0  ;;  %s608_s9 = smov 0   ;;  %s610_s10 = smov 0  }
   0x2   :  { %s612_s11 = smov 0   ;;  %s614_s12 = smov 0  }
   0x3   :  { %s616_s13 = smov 0   ;;  %s618_s14 = smov 0  }
   0x4 LB: > { %s421_s15 = sadd.s32 4294967295, %s587_s14   ;;  %s28_s16 = sadd.s32 1, %s583_s13  ;;  %s587_s14 = sphi %s618_s14, %s16_s14   ;;  %s583_s13 = sphi %s616_s13, %s777_s13   ;;  %s579_s12 = sphi %s614_s12, %s776_s12   ;;  %s575_s11 = sphi %s612_s11, %s775_s11   ;;  %s571_s10 = sphi %s610_s10, %s774_s10   ;;  %s567_s9 = sphi %s608_s9, %s773_s9  }
   0x5   : > { %p30_p0 = scmp.ge.s32.totalorder %s28_s16, 2  ;;  %s37_s17 = sadd.s32 1, %s575_s11 }
   0x6   : > { %p44_p1 = scmp.ne.s32.totalorder %s575_s11, %s571_s10  ;;  %p45_p2 = scmp.eq.s32.totalorder %s587_s14, 0 }
   0x7   : > { %s779_s16 = smov (%p30_p0, %s28_s16), 0  ;;  %p50_p4 = scmp.ne.s32.totalorder %s571_s10, %s567_s9 }
   0x8   : > { %p644_p3 = por %p45_p2, %p44_p1  ;;  %s32_s19 = ssub.s32 %s583_s13, %s779_s16 }
   0x9   : > { %p51_p5 = scmp.eq.s32.totalorder %s421_s15, 0  ;;  %p35_p6 = scmp.eq.s32.totalorder %s32_s19, 0 }
   0xa   : > { %p441_p8 = scmp.lt.s32.totalorder %s587_s14, 2  ;;  %s126_s22 = sand.u32 1, %s575_s11  }
   0xb   : > { %p651_p7 = por %p51_p5, %p50_p4  ;;  %s434_s23 = sshll.u32 %s583_s13, 9 }
   0xc   : > { %s657_s21 = scalar_select %p35_p6, %s575_s11, %s37_s17  }
   0xd   : > { %s425_s24 = sshll.u32 %s126_s22, 5  ;;  %s664_s27 = scalar_lea.hbm %s765_s0, %s434_s23 }
   0xe   : > { %s130_s28 = scalar_lea.vmem [#allocation8], %s425_s24  ;;  %p668_p9 = pnand %p441_p8, %p644_p3 }
   0xf   : > { %s140_s29 = sshll.u32 %s130_s28, 4  ;;  %s127_s3 = scalar_lea.sflag [#allocation9], %s126_s22  ;;  %s672_s29 = int_to_ptr.vmem [resolvable:$true] %s140_s29 }
  0x10   : > { %s507_s4 = scalar_lea.hbm %s664_s27, 512  ;;  %p509_p13 = pneg %p668_p9 }
  0x11   : > { %p508_p12 = scmp.ne.s32.totalorder %s664_s27, %s507_s4  ;;  %s512_s7 = scalar_lea.hbm %s765_s0, 1024 }
  0x12   : > { %p513_p2 = scmp.lt.u32.totalorder %s664_s27, %s765_s0  ;;  %p514_p3 = scmp.lt.u32.totalorder %s512_s7, %s507_s4 }
  0x13   : > { %p510_p0 = pnand %p509_p13, %p508_p12  ;;  %p516_p5 = scmp.lt.u32.totalorder %s507_s4, %s664_s27 }
  0x14   : > { %p515_p4 = por %p514_p3, %p513_p2 }
  0x15   : > { %p511_p1 = pneg %p510_p0 }
  0x16   : > { %p517_p6 = por %p516_p5, %p515_p4 }
  0x18   : > { %p518_p8 = pnand %p517_p6, %p511_p1 }
  0x1a   : > { %521 = shalt.err (!%p518_p8)
}
  0x1b   : > { %s522_s15 = scalar_lea.vmem %s672_s29, 512  ;;  %s589_s17 = smov [#allocation8]  }
  0x1c   : > { %p523_p12 = scmp.ne.s32.totalorder %s672_s29, %s522_s15  ;;  %s527_s18 = sshll.u32 %s589_s17, 4  ;;  %s528_s18 = int_to_ptr.vmem [resolvable:$false] %s527_s18 }
  0x1d   : > { %s529_s19 = scalar_lea.vmem %s528_s18, 1024  ;;  %p530_p11 = scmp.lt.s32.totalorder %s672_s29, %s528_s18 }
  0x1e   : > { %p525_p0 = pnand %p523_p12, %p509_p13  ;;  %p531_p2 = scmp.lt.s32.totalorder %s529_s19, %s522_s15 }
  0x20   : > { %p526_p10 = pneg %p525_p0  ;;  %p532_p3 = por %p531_p2, %p530_p11 }
  0x22   : > { %p533_p4 = pnand %p532_p3, %p526_p10 }
  0x24   : > { %536 = shalt.err (!%p533_p4)
}
  0x25   : > { %440 = dma.hbm_to_vmem [thread:$0]  (!%p668_p9), %s664_s27, 512, %s672_s29, %s127_s3  }
  0x26   : > { %p771_p1 = scmp.lt.s32.totalorder %s587_s14, 3  ;;  %p772_p5 = scmp.ge.s32.totalorder %s587_s14, 1 }
  0x28   : > { %p146_p13 = pnand %p772_p5, %p771_p1 }
  0x29   : > { %s151_s22 = sand.u32 (!%p146_p13), 1, %s571_s10  }
  0x2a   : > { %149 = sbr.rel (%p146_p13) target bundleno = 514 (0x202), region = 24  ;;  %s429_s23 = sshll.u32 (!%p146_p13), %s151_s22, 5 }
  0x2b   : > { %s152_s24 = scalar_lea.sflag (!%p146_p13), [#allocation9], %s151_s22  ;;  %s155_s25 = scalar_lea.vmem (!%p146_p13), [#allocation8], %s429_s23 }
  0x31   : > { %562 = dma.done.wait (%p651_p7), %s152_s24, 512  }
  0x32   : > { %564 = vsyncadd (%p651_p7), %s152_s24, 4294966784  ;;  %v200_v0 = vlaneseq  ;;  %v196_v3 = vld [vmem:[%s155_s25] sm:$0xff]  ;;  %v197_v4 = vld [vmem:[%s155_s25 + $0x8] sm:$0xff]  ;;  %vm192_vm2 = vcmask 7168   ;;  %v590_v12 = vmov -inf   ;;  %v591_v13 = vmov 0.0  }
  0x33   : > { %v198_v5 = vld [vmem:[%s155_s25 + $0x10] sm:$0xff]  ;;  %v199_v6 = vld [vmem:[%s155_s25 + $0x18] sm:$0xff]  ;;  %193 = vst.msk [vmem:[#allocation2] sm:$0xff] %vm192_vm2, %v590_v12  ;;  %195 = vst.msk [vmem:[#allocation4] sm:$0xff] %vm192_vm2, %v591_v13  ;;  %v592_v49 = vmov 64   ;;  %p180_p7 = scmp.lt.s32.totalorder %s579_s12, 1 }
  0x34   : > { %v201_v1 = vand.u32 127, %v200_v0  ;;  %194 = vst.msk [vmem:[#allocation3] sm:$0xff] %vm192_vm2, %v592_v49 }
  0x35   : > { %s781_s12 = smov (!%p180_p7, %s579_s12), 1 }
  0x36   : > { %v204_v2 = vadd.s32 384, %v201_v1  ;;  %vm209_vm0 = vcmp.ge.s32.totalorder %v201_v1, 64  ;;  %v202_v14 = vadd.s32 128, %v201_v1  ;;  %v203_v15 = vadd.s32 256, %v201_v1  ;;  %s430_s20 = sshll.u32 %s781_s12, 3 }
  0x37   : > { %v222_v7 = vsel %vm209_vm0, %v196_v3, -inf  ;;  %s187_s28 = scalar_lea.vmem %s767_s2, %s430_s20  ;;  %s183_s30 = scalar_lea.vmem %s766_s1, %s430_s20 }
  0x38   : > { %vm217_vm1 = vcmp.lt.s32.totalorder %v204_v2, 448  ;;  %v226_v9 = vmax.f32 %v222_v7, %v197_v4 }
  0x39   : > { %v225_v8 = vsel %vm217_vm1, %v199_v6, -inf }
  0x3a   : > { %v227_v10 = vmax.f32 %v198_v5, %v225_v8  ;;  %v714_v17 = vld [vmem:[#allocation2] sm:$0xff]  ;;  %v298_v58 = vld [vmem:[#allocation4] sm:$0xff] }
  0x3b   : > { %vm282_vm13 = vcmp.eq.f32.partialorder %v714_v17, -inf }
  0x3c   : > { %v228_v11 = vmax.f32 %v226_v9, %v227_v10 }
  0x3e   : > { %229 = vmax.xlane.f32.xlu0 %v228_v11 }
  0xcb   : > { %v712_v16 = vpop.xlane.xlu0 %229 }
  0xcc   : > { %vm231_vm3 = vcmp.eq.f32.partialorder %v222_v7, %v712_v16  ;;  %vm232_vm4 = vcmp.eq.f32.partialorder %v197_v4, %v712_v16  ;;  %vm233_vm5 = vcmp.eq.f32.partialorder %v198_v5, %v712_v16  ;;  %vm234_vm6 = vcmp.eq.f32.partialorder %v225_v8, %v712_v16 }
  0xcd   : > { %v235_v18 = vsel %vm231_vm3, %v201_v1, 1073741824  ;;  %v236_v19 = vsel %vm232_vm4, %v202_v14, 1073741824  ;;  %v237_v20 = vsel %vm233_vm5, %v203_v15, 1073741824  ;;  %v238_v21 = vsel %vm234_vm6, %v204_v2, 1073741824 }
  0xce   : > { %vm239_vm7 = vcmp.lt.s32.totalorder %v235_v18, %v236_v19  ;;  %vm241_vm8 = vcmp.lt.s32.totalorder %v237_v20, %v238_v21  ;;  %vm259_vm9 = vcmp.eq.f32.partialorder %v712_v16, -inf  ;;  %v279_v22 = vmax.f32 %v714_v17, %v712_v16 }
  0xcf   : > { %v240_v23 = vsel %vm239_vm7, %v235_v18, %v236_v19  ;;  %v242_v24 = vsel %vm241_vm8, %v237_v20, %v238_v21  ;;  %v260_v25 = vsel %vm259_vm9, 0.0, %v712_v16  ;;  %vm291_vm14 = vcmp.gt.f32.partialorder %v712_v16, %v714_v17 }
  0xd0   : > { %vm243_vm10 = vcmp.lt.s32.totalorder %v240_v23, %v242_v24  ;;  %v261_v26 = vsub.f32 %v222_v7, %v260_v25  ;;  %v262_v27 = vsub.f32 %v197_v4, %v260_v25  ;;  %v263_v28 = vsub.f32 %v198_v5, %v260_v25  ;;  %303 = vst.msk [vmem:[#allocation2] sm:$0xff] %vm192_vm2, %v279_v22  ;;  %v294_v7 = vld [vmem:[#allocation3] sm:$0xff] }
  0xd1   : > { %v244_v29 = vsel %vm243_vm10, %v240_v23, %v242_v24  ;;  %v264_v30 = vsub.f32 %v225_v8, %v260_v25  ;;  %vm280_vm11 = vcmp.eq.f32.partialorder %v279_v22, -inf }
  0xd2   : > { %v246_v31 = vshra.s32 %v244_v29, 16  ;;  %v265_v32 = vmul.f32 1.442695, %v261_v26  ;;  %v267_v33 = vmul.f32 1.442695, %v262_v27  ;;  %v281_v35 = vsel %vm280_vm11, 0.0, %v279_v22 }
  0xd3   : > { %v269_v34 = vmul.f32 1.442695, %v263_v28  ;;  %v271_v37 = vmul.f32 1.442695, %v264_v30  ;;  %v287_v38 = vsub.f32 %v712_v16, %v281_v35  ;;  %v283_v50 = vsub.f32 %v714_v17, %v281_v35 }
  0xd4   : > { %v248_v36 = vcvt.s32.f32 %v246_v31  ;;  %493 = vpow2.f32 %v265_v32  ;;  %v245_v51 = vand.u32 65535, %v244_v29 }
  0xd5   : > { %495 = vpow2.f32 %v267_v33  ;;  %v288_v39 = vmul.f32 1.442695, %v287_v38  ;;  %v284_v52 = vmul.f32 1.442695, %v283_v50 }
  0xd6   : > { %249 = vmin.xlane.f32.xlu0 %v248_v36  ;;  %497 = vpow2.f32 %v269_v34  ;;  %v247_v54 = vcvt.s32.f32 %v245_v51 }
  0xd7   : > { %499 = vpow2.f32 %v271_v37 }
  0xd8   : > { %501 = vpow2.f32 %v288_v39 }
  0xd9   : > { %503 = vpow2.f32 %v284_v52 }
  0xde   : > { %v494_v40 = vpop.eup %493 }
  0xdf   : > { %v496_v41 = vpop.eup %495 }
  0xe0   : > { %v273_v42 = vadd.f32 %v496_v41, %v494_v40  ;;  %v498_v43 = vpop.eup %497 }
  0xe1   : > { %v500_v44 = vpop.eup %499 }
  0xe2   : > { %v274_v45 = vadd.f32 %v498_v43, %v273_v42  ;;  %v502_v46 = vpop.eup %501 }
  0xe3   : > { %v290_v48 = vsel %vm259_vm9, 0.0, %v502_v46  ;;  %v504_v56 = vpop.eup %503 }
  0xe4   : > { %v275_v47 = vadd.f32 %v500_v44, %v274_v45  ;;  %v286_v57 = vsel %vm282_vm13, 0.0, %v504_v56 }
  0xe5   : > { %v299_v60 = vmul.f32 %v298_v58, %v286_v57 }
  0xe6   : > { %276 = vadd.xlane.f32.xlu1 %v275_v47 }
 0x163   : > { %v250_v53 = vpop.xlane.xlu0 %249 }
 0x164   : > { %vm251_vm12 = vcmp.eq.f32.partialorder %v248_v36, %v250_v53  ;;  %v256_v3 = vcvt.f32.s32 %v250_v53 }
 0x165   : > { %v252_v55 = vsel %vm251_vm12, %v247_v54, inf }
 0x166   : > { %253 = vmin.xlane.f32.xlu1 %v252_v55  ;;  %v257_v5 = vshll.u32 %v256_v3, 16 }
 0x173   : > { %v277_v59 = vpop.xlane.xlu1 %276 }
 0x174   : > { %v300_v61 = vmul.f32 %v290_v48, %v277_v59 }
 0x176   : > { %v301_v62 = vadd.f32 %v300_v61, %v299_v60 }
 0x178   : > { %302 = vst.msk [vmem:[#allocation4] sm:$0xff] %vm192_vm2, %v301_v62 }
 0x17f   : > { %v309_v63 = vld [vmem:[#allocation4] sm:$0xff] }
 0x180   : > { %505 = vlog2.f32 %v309_v63 }
 0x18a   : > { %v506_v0 = vpop.eup %505 }
 0x18b   : > { %v311_v1 = vmul.f32 0.6931472, %v506_v0 }
 0x18d   : > { %v312_v2 = vsub.f32 0.0, %v311_v1 }
 0x18f   : > { %313 = vst.msk [vmem:[%s187_s28] sm:$0xff] %vm192_vm2, %v312_v2 }
 0x1f3   : > { %v254_v4 = vpop.xlane.xlu1 %253 }
 0x1f4   : > { %v255_v6 = vcvt.f32.s32 %v254_v4 }
 0x1f6   : > { %v258_v8 = vadd.s32 %v257_v5, %v255_v6 }
 0x1f8   : > { %v295_v9 = vsel %vm291_vm14, %v258_v8, %v294_v7 }
 0x1f9   : > { %297 = vst.msk [vmem:[#allocation3] sm:$0xff] %vm192_vm2, %v295_v9 }
 0x200   : > { %v307_v10 = vld [vmem:[#allocation3] sm:$0xff] }
 0x201   : > { %308 = vst.msk [vmem:[%s183_s30] sm:$0xff] %vm192_vm2, %v307_v10 }
 0x202 PF: > { %s16_s14 = sadd.s32 1, %s587_s14   ;;  %s773_s9 = smov %s571_s10 }
 0x203   : > { %p13_p9 = scmp.ge.s32.totalorder %s16_s14, 4   ;;  %s774_s10 = smov %s575_s11 }
 0x204   : > { %s775_s11 = smov %s657_s21  ;;  %s776_s12 = smov %s583_s13 }
 0x205   : > { %s777_s13 = smov %s779_s16  ;;  %15 = sbr.rel (!%p13_p9) target bundleno = 4 (0x4), region = 84 }
 0x20c   :  { %347 = vsyncpa [#allocation9], 1 }
 0x20d   :  { %349 = vsyncpa [#allocation9 + $0x1], 1 }

</bundles_post_ra>
